<compile_context>
chip_gen: v7x
topology: tpu7x:2x2x1
jax: 0.10.0
libtpu: 0.0.40
codegen_flags: <defaults>
</compile_context>

<pallas_src>
import functools

import jax
import jax.numpy as jnp
from jax.experimental import pallas as pl
from jax.experimental.pallas import tpu as pltpu


def _round_up(x, m):
    return (x + m - 1) // m * m


def _trmumoe_kernel(x_ref, wa_ref, wz_ref, w2_ref, o_ref):
    # x_ref : (TN, E+D+1)         bf16, fused [a | z | 1] token rows
    # wa_ref: (E+D+1, R1*R2*R3)   bf16, W0 expanded over r3 (z/bias rows zero)
    # wz_ref: (E+D+1, R1*R2*R3)   bf16, W1 expanded over r1 (a rows zero)
    # w2_ref: (R1*R2*R3, Opad)    f32,  W2 replicated over r2, zero-padded cols
    # o_ref : (TN, Opad)          f32
    x = x_ref[...]
    a_exp = jnp.dot(x, wa_ref[...], preferred_element_type=jnp.float32)  # (TN, RRR)
    z_exp = jnp.dot(x, wz_ref[...], preferred_element_type=jnp.float32)  # (TN, RRR)
    p = a_exp * z_exp                                  # A[n,r1,r2] * Z[n,r2,r3]
    o_ref[...] = jnp.dot(p, w2_ref[...],
                         preferred_element_type=jnp.float32).astype(o_ref.dtype)


@functools.partial(jax.jit, static_argnames=("tn_target",))
def trmumoe_forward(z, a0, W0, W1, W2, *, tn_target=512):
    """z: (B, T, D), a0: (B, T, E) gating input (already 'activated' upstream).

    W0: (R1, E, R2), W1: (R2, D+1, R3), W2: (R3, O, R1).
    Returns (B, T, O) float32 — same semantics as TRMuMoE.forward
    (hierarchy=1, use_bias=True).
    """
    B, T, D = z.shape
    E = a0.shape[-1]
    R1, E_w, R2 = W0.shape
    R2_w, Dp1, R3 = W1.shape
    R3_w, O, R1_w = W2.shape
    assert (E_w, R2_w, Dp1, R3_w, R1_w) == (E, R2, D + 1, R3, R1)
    RRR = R1 * R2 * R3
    K = E + D + 1
    N = B * T

    # ---- token tiling: large uniform tiles, pad N (padded rows are all-zero
    #      and produce zero outputs that we slice off) ------------------------
    num_tiles = max(1, -(-N // tn_target))
    TN = -(-N // num_tiles)
    TN = _round_up(TN, 256) if TN >= 256 else _round_up(TN, 8)
    Npad = num_tiles * TN

    # Lane-dense stores: pad output columns to a multiple of 128 (extra
    # columns of w2e are zero, so padded outputs are exactly zero).
    Opad = _round_up(O, 128)

    # ---- plain-JAX glue (jit-fused): fused input + expanded TR factors ------
    ones = jnp.ones((B, T, 1), jnp.float32)
    x_cat = jnp.concatenate(
        [a0.astype(jnp.float32), z.astype(jnp.float32), ones], axis=-1
    ).reshape(N, K)
    x_cat = jnp.pad(x_cat, ((0, Npad - N), (0, 0))).astype(jnp.bfloat16)

    # wa[k, (r1,r2,r3)] = W0[r1, k, r2]  for k < E, else 0.
    w0_exp = jnp.broadcast_to(
        jnp.transpose(W0, (1, 0, 2))[:, :, :, None], (E, R1, R2, R3)
    ).reshape(E, RRR)
    wa = jnp.zeros((K, RRR), jnp.float32).at[:E, :].set(w0_exp).astype(jnp.bfloat16)

    # wz[E + k, (r1,r2,r3)] = W1[r2, k, r3]  (bias row folded in), else 0.
    w1_exp = jnp.broadcast_to(
        jnp.transpose(W1, (1, 0, 2))[:, None, :, :], (Dp1, R1, R2, R3)
    ).reshape(Dp1, RRR)
    wz = jnp.zeros((K, RRR), jnp.float32).at[E:, :].set(w1_exp).astype(jnp.bfloat16)

    # w2e[(r1,r2,r3), o] = W2[r3, o, r1]  (replicated over r2), kept f32,
    # zero-padded to Opad lanes.
    w2e = jnp.broadcast_to(
        jnp.transpose(W2, (2, 0, 1))[:, None, :, :], (R1, R2, R3, O)
    ).reshape(RRR, O)
    w2e = jnp.pad(w2e, ((0, 0), (0, Opad - O))).astype(jnp.float32)

    grid = (Npad // TN,)
    out = pl.pallas_call(
        _trmumoe_kernel,
        out_shape=jax.ShapeDtypeStruct((Npad, Opad), jnp.float32),
        grid=grid,
        in_specs=[
            pl.BlockSpec((TN, K), lambda i: (i, 0)),       # streamed token rows
            pl.BlockSpec((K, RRR), lambda i: (0, 0)),      # grid-invariant weights
            pl.BlockSpec((K, RRR), lambda i: (0, 0)),
            pl.BlockSpec((RRR, Opad), lambda i: (0, 0)),
        ],
        out_specs=pl.BlockSpec((TN, Opad), lambda i: (i, 0)),
        # Blocks are small (a few MiB even for hidden-size K/O with TN=512);
        # the default scoped VMEM limit is ample.  Raise vmem_limit_bytes only
        # if D/E/O or TN are pushed much larger.
        compiler_params=pltpu.CompilerParams(
            dimension_semantics=("parallel",)),
    )(x_cat, wa, wz, w2e)

    return out[:N, :O].reshape(B, T, O)


def trmumoe_reference(z, a0, W0, W1, W2):
    """Pure-JAX transcription of the PyTorch forward (hierarchy=1, use_bias=True)."""
    hp = jax.lax.Precision.HIGHEST
    ones = jnp.ones(z.shape[:2] + (1,), z.dtype)
    zb = jnp.concatenate([z, ones], axis=-1)
    train = jnp.einsum('btx,rxs->btrs', a0, W0, precision=hp)        # b t r1 r2
    zw = jnp.einsum('btx,rxs->btrs', zb, W1, precision=hp)           # b t r2 r3
    train = jnp.einsum('btqs,btrq->btrs', zw, train, precision=hp)   # b t r1 r3
    out = jnp.einsum('sor,btrs->bto', W2, train, precision=hp)       # b t o
    return out


def init_params(key, input_dim, output_dim, expert_dim, r1, r2, r3):
    """Deterministic re-creation of TRMuMoE.__init__ parameter shapes/scheme."""
    k0, k1, k2 = jax.random.split(key, 3)
    # factors[0]: (r1, expert_dim, r2), eye * (randn * var + 1.0) with var=1.0
    eye = jnp.eye(r1, r2, dtype=jnp.float32)
    noise = jax.random.normal(k0, (expert_dim, r1, r2), dtype=jnp.float32) + 1.0
    W0 = jnp.transpose(eye[None, :, :] * noise, (1, 0, 2))            # (r1, E, r2)
    # factors[1]: (r2, input_dim + 1, r3), U(+-sqrt(1/input_dim))
    b1 = (1.0 / input_dim) ** 0.5
    W1 = jax.random.uniform(k1, (r2, input_dim + 1, r3),
                            minval=-b1, maxval=b1, dtype=jnp.float32)
    # factors[2]: (r3, output_dim, r1), U(+-sqrt(1/(r3*r1)))
    b2 = (1.0 / (r3 * r1)) ** 0.5
    W2 = jax.random.uniform(k2, (r3, output_dim, r1),
                            minval=-b2, maxval=b2, dtype=jnp.float32)
    return W0, W1, W2


if __name__ == "__main__":
    # Small shapes consistent with the module: (batch, tokens, channels) inputs.
    B, T = 2, 8
    input_dim, output_dim = 32, 16
    expert_dim = 4                 # expert_dims = [4]
    r1 = r2 = r3 = 4               # ranks = [[4, _, 4], [4, _, 4], [4, _, 4]]

    key = jax.random.PRNGKey(0)
    kp, kz, ka = jax.random.split(key, 3)
    W0, W1, W2 = init_params(kp, input_dim, output_dim, expert_dim, r1, r2, r3)

    z = jax.random.normal(kz, (B, T, input_dim), dtype=jnp.float32)
    # Gating input a[0]; the PyTorch forward uses it as-is (entmax/softmax gate
    # activation is applied upstream of forward), so build a softmax gate here.
    a0 = jax.nn.softmax(jax.random.normal(ka, (B, T, expert_dim),
                                          dtype=jnp.float32), axis=-1)

    out = jax.block_until_ready(trmumoe_forward(z, a0, W0, W1, W2))
    assert out.shape == (B, T, output_dim)

    # Tight check: identical math on bf16-rounded streamed operands
    # (what the kernel actually consumes; W2 stays f32 in the kernel).
    rd = lambda x: x.astype(jnp.bfloat16).astype(jnp.float32)
    ref_q = jax.block_until_ready(
        trmumoe_reference(rd(z), rd(a0), rd(W0), rd(W1), W2))
    assert jnp.allclose(out, ref_q, atol=1e-3, rtol=1e-3), \
        f"max abs err vs bf16-input ref {jnp.max(jnp.abs(out - ref_q))}"

    # Loose check against the full-f32 reference (only bf16 input quantization
    # separates the two).
    ref = jax.block_until_ready(trmumoe_reference(z, a0, W0, W1, W2))
    assert jnp.allclose(out, ref, atol=5e-2, rtol=5e-2), \
        f"max abs err vs f32 ref {jnp.max(jnp.abs(out - ref))}"

    print("KERNEL_OK")
</pallas_src>

<mosaic_0001>
module attributes {stable_mosaic.version = 11 : i64} {
  func.func @_trmumoe_kernel(%arg0: i32, %arg1: memref<16x37xbf16, #tpu.memory_space<vmem>>, %arg2: memref<37x64xbf16, #tpu.memory_space<vmem>>, %arg3: memref<37x64xbf16, #tpu.memory_space<vmem>>, %arg4: memref<64x128xf32, #tpu.memory_space<vmem>>, %arg5: memref<16x128xf32, #tpu.memory_space<vmem>>) attributes {dimension_semantics = [#tpu.dimension_semantics<parallel>], iteration_bounds = array<i64: 1>, scalar_prefetch = 0 : i64, scratch_operands = 0 : i64, tpu.core_type = #tpu.core_type<tc>, window_params = [{transform_indices = @transform_0, window_bounds = array<i64: 16, 37>}, {pipeline_mode = #tpu.pipeline_mode<synchronous>, transform_indices = @transform_1, window_bounds = array<i64: 37, 64>}, {pipeline_mode = #tpu.pipeline_mode<synchronous>, transform_indices = @transform_2, window_bounds = array<i64: 37, 64>}, {pipeline_mode = #tpu.pipeline_mode<synchronous>, transform_indices = @transform_3, window_bounds = array<i64: 64, 128>}, {transform_indices = @transform_4, window_bounds = array<i64: 16, 128>}]} {
    %c0 = arith.constant 0 : index
    %c0_0 = arith.constant 0 : index
    %0 = vector.load %arg1[%c0, %c0_0] : memref<16x37xbf16, #tpu.memory_space<vmem>>, vector<16x37xbf16>
    %c0_1 = arith.constant 0 : index
    %c0_2 = arith.constant 0 : index
    %1 = vector.load %arg2[%c0_1, %c0_2] : memref<37x64xbf16, #tpu.memory_space<vmem>>, vector<37x64xbf16>
    %cst = arith.constant dense<0.000000e+00> : vector<16x64xf32>
    %2 = tpu.matmul %0, %1, %cst {dimension_numbers = #tpu.dot_dimension_numbers<[1], [0], [0], [1], [0, 0, 1, 1], [], []>} : vector<16x37xbf16>, vector<37x64xbf16>, vector<16x64xf32> -> vector<16x64xf32>
    %c0_3 = arith.constant 0 : index
    %c0_4 = arith.constant 0 : index
    %3 = vector.load %arg3[%c0_3, %c0_4] : memref<37x64xbf16, #tpu.memory_space<vmem>>, vector<37x64xbf16>
    %cst_5 = arith.constant dense<0.000000e+00> : vector<16x64xf32>
    %4 = tpu.matmul %0, %3, %cst_5 {dimension_numbers = #tpu.dot_dimension_numbers<[1], [0], [0], [1], [0, 0, 1, 1], [], []>} : vector<16x37xbf16>, vector<37x64xbf16>, vector<16x64xf32> -> vector<16x64xf32>
    %5 = arith.mulf %2, %4 : vector<16x64xf32>
    %c0_6 = arith.constant 0 : index
    %c0_7 = arith.constant 0 : index
    %6 = vector.load %arg4[%c0_6, %c0_7] : memref<64x128xf32, #tpu.memory_space<vmem>>, vector<64x128xf32>
    %cst_8 = arith.constant dense<0.000000e+00> : vector<16x128xf32>
    %7 = tpu.matmul %5, %6, %cst_8 {dimension_numbers = #tpu.dot_dimension_numbers<[1], [0], [0], [1], [0, 0, 1, 1], [], []>} : vector<16x64xf32>, vector<64x128xf32>, vector<16x128xf32> -> vector<16x128xf32>
    %c0_9 = arith.constant 0 : index
    %c0_10 = arith.constant 0 : index
    %8 = vector.load %arg5[%c0_9, %c0_10] : memref<16x128xf32, #tpu.memory_space<vmem>>, vector<16x128xf32>
    tpu.vector_store %arg5[%c0_9, %c0_10], %7 {strides = array<i32>} : memref<16x128xf32, #tpu.memory_space<vmem>>, vector<16x128xf32>,
    return
  }
  func.func @transform_0(%arg0: i32) -> (i32, i32) {
    %c0_i32 = arith.constant 0 : i32
    %c0_i32_0 = arith.constant 0 : i32
    return %arg0, %c0_i32 : i32, i32
  }
  func.func @transform_1(%arg0: i32) -> (i32, i32) {
    %c0_i32 = arith.constant 0 : i32
    %c0_i32_0 = arith.constant 0 : i32
    %c0_i32_1 = arith.constant 0 : i32
    return %c0_i32, %c0_i32_0 : i32, i32
  }
  func.func @transform_2(%arg0: i32) -> (i32, i32) {
    %c0_i32 = arith.constant 0 : i32
    %c0_i32_0 = arith.constant 0 : i32
    %c0_i32_1 = arith.constant 0 : i32
    return %c0_i32, %c0_i32_0 : i32, i32
  }
  func.func @transform_3(%arg0: i32) -> (i32, i32) {
    %c0_i32 = arith.constant 0 : i32
    %c0_i32_0 = arith.constant 0 : i32
    %c0_i32_1 = arith.constant 0 : i32
    return %c0_i32, %c0_i32_0 : i32, i32
  }
  func.func @transform_4(%arg0: i32) -> (i32, i32) {
    %c0_i32 = arith.constant 0 : i32
    %c0_i32_0 = arith.constant 0 : i32
    return %arg0, %c0_i32 : i32, i32
  }
}

</mosaic_0001>

<bundles_post_ra>
// kernel: trmumoe_forward.1
= control target key start
LH: loop header
LB: loop body
LE: loop exit
PB: predicated region body
PF: predicated region fallthrough
CT: control target
= control target key end

     0   :  { %vm49_vm0 = vcmask 1041408   ;;  %vm50_vm1 = vcmask 1042432   ;;  %v353_v0 = vmov 0.0   ;;  %v354_v2 = vmov 65535   ;;  %s432_s1 = inlined_call_operand.vmem [shape: bf16[37,64], index: 1, kind: input, shape index: {}]   ;;  %s433_s2 = inlined_call_operand.vmem [shape: bf16[37,64], index: 2, kind: input, shape index: {}]   ;;  %s434_s3 = inlined_call_operand.vmem [shape: f32[64,128], index: 3, kind: input, shape index: {}]   ;;  %s435_s0 = inlined_call_operand.vmem [shape: bf16[16,37], index: 0, kind: input, shape index: {}]   ;;  %s436_s4 = inlined_call_operand.vmem [shape: f32[16,128], index: 4, kind: output, shape index: {}]  }
   0x1   :  { %288 = vmatprep.subr.bf16.mxu0 %v353_v0  ;;  %298 = vmatprep.subr.bf16.mxu1 %v353_v0  ;;  %v346_v1 = vld [vmem:[%s432_s1] sm:$0xff]   ;;  %v51_v3 = vsel %vm49_vm0, 4294967295, %v354_v2  ;;  %v348_v5 = vld [vmem:[%s432_s1 + $0x8] sm:$0xff]   ;;  %v350_v8 = vld [vmem:[%s432_s1 + $0x10] ss:$0 sps:$4 sm:$0x77]  }
   0x2   :  { %v347_v4 = vld [vmem:[%s433_s2] sm:$0xff]   ;;  %289 = vmatpush3.bf16.msra.mxu0 %v346_v1  ;;  %v349_v6 = vld [vmem:[%s433_s2 + $0x8] sm:$0xff]   ;;  %v52_v7 = vsel %vm50_vm1, %v51_v3, 0  ;;  %vm355_vm2 = vmmov 0   ;;  %v165_v15 = vld [vmem:[%s434_s3 + $0x10] sm:$0xff]  ;;  %vm45_vm3 = vcmask 302080  }
   0x3   :  { %299 = vmatpush3.bf16.msra.mxu1 %v347_v4  ;;  %290 = vmatprep.subr.bf16.mxu0 %v353_v0  ;;  %v351_v9 = vld [vmem:[%s433_s2 + $0x10] ss:$0 sps:$4 sm:$0x77]   ;;  %v163_v10 = vld [vmem:[%s434_s3] sm:$0xff]  ;;  %v54_v11 = vand.u32 %v350_v8, %v52_v7  ;;  %v164_v12 = vld [vmem:[%s434_s3 + $0x8] sm:$0xff]  ;;  %vm171_vm4 = vcmask 523264  }
   0x4   :  { %300 = vmatprep.subr.bf16.mxu1 %v353_v0  ;;  %294 = vmatprep.mubr.msk.bf16.mxu0 %vm355_vm2, %v353_v0  ;;  %v118_v13 = vand.u32 %v351_v9, %v52_v7  ;;  %v327_v14 = vpack.c.bf16 %v164_v12, %v163_v10  ;;  %v166_v16 = vld [vmem:[%s434_s3 + $0x18] sm:$0xff]  ;;  %v352_v17 = vld [vmem:[%s435_s0] sm:$0xff]   ;;  %v168_v20 = vld [vmem:[%s434_s3 + $0x28] sm:$0xff] }
   0x5   :  { %304 = vmatprep.mubr.msk.bf16.mxu1 %vm355_vm2, %v353_v0  ;;  %v331_v18 = vpack.c.bf16 %v166_v16, %v165_v15  ;;  %v167_v19 = vld [vmem:[%s434_s3 + $0x20] sm:$0xff]  ;;  %v169_v22 = vld [vmem:[%s434_s3 + $0x30] sm:$0xff]  ;;  %v170_v23 = vld [vmem:[%s434_s3 + $0x38] sm:$0xff] }
   0x6   :  { %291 = vmatpush3.bf16.msra.mxu0 %v348_v5  ;;  %v335_v21 = vpack.c.bf16 %v168_v20, %v167_v19  ;;  %v339_v24 = vpack.c.bf16 %v170_v23, %v169_v22 }
   0x7   :  { %301 = vmatpush3.bf16.msra.mxu1 %v349_v6  ;;  %292 = vmatprep.subr.bf16.mxu0 %v353_v0 }
   0x8   :  { %302 = vmatprep.subr.bf16.mxu1 %v353_v0 }
   0xa   :  { %293 = vmatpush3.bf16.msra.mxu0 %v54_v11 }
   0xb   :  { %303 = vmatpush3.bf16.msra.mxu1 %v118_v13  ;;  %328 = vmatprep.subr.bf16.mxu0 %v327_v14 }
   0xd   :  { %295 = vmatmul.mubr.msk.bf16.vlgmr.msra.gmra.mrb[0].mxu0 %vm45_vm3, %v352_v17 }
   0xe   :  { %305 = vmatmul.mubr.msk.bf16.vlgmr.msra.gmra.mrb[0].mxu1 %vm45_vm3, %v352_v17  ;;  %330 = vmatpush3.bf16.msra.mxu0 %v327_v14 }
   0xf   :  { %332 = vmatprep.subr.bf16.mxu0 %v331_v18 }
  0x12   :  { %334 = vmatpush3.bf16.msra.mxu0 %v331_v18 }
  0x13   :  { %336 = vmatprep.subr.bf16.mxu0 %v335_v21 }
  0x16   :  { %338 = vmatpush3.bf16.msra.mxu0 %v335_v21 }
  0x17   :  { %340 = vmatprep.subr.bf16.mxu0 %v339_v24 }
  0x1a   :  { %342 = vmatpush3.bf16.msra.mxu0 %v339_v24 }
  0xe0   :  { %v90_v25 = vpop.f32.mrb[0].mxu0 }
  0xe1   :  { %v154_v26 = vpop.f32.mrb[0].mxu1  ;;  %v296_v27 = vpop.f32.mrb[1].mxu0 }
  0xe2   :  { %v161_v28 = vmul.f32 %v154_v26, %v90_v25  ;;  %v306_v29 = vpop.f32.mrb[1].mxu1  ;;  %v93_v30 = vpop.f32.mrb[2].mxu0 }
  0xe3   :  { %v157_v31 = vpop.f32.mrb[2].mxu1  ;;  %v297_v32 = vpop.f32.mrb[3].mxu0 }
  0xe4   :  { %v162_v33 = vmul.f32 %v157_v31, %v93_v30  ;;  %v307_v34 = vpop.f32.mrb[3].mxu1  ;;  %324 = vmatprep.mubr.msk.f32.mxu0 %vm171_vm4, %v161_v28 }
  0xe6   :  { %325 = vmatmul.mubr.msk.f32.vlgmr.msra.gmra.mrb[4].mxu0 %vm171_vm4, %v162_v33 }
 0x1b9   :  { %v326_v35 = vpop.f32.mrb[4].mxu0 }
 0x1ba   :  { %254 = vst [vmem:[%s436_s4 + $0x8] sm:$0xff] %v326_v35  ;;  %v244_v36 = vpop.f32.mrb[5].mxu0 }
 0x1bb   :  { %253 = vst [vmem:[%s436_s4] sm:$0xff] %v244_v36 }

</bundles_post_ra>
